<compile_context>
chip_gen: v7x
topology: tpu7x:2x2x1
jax: 0.10.0
libtpu: 0.0.40
codegen_flags: <defaults>
</compile_context>

<pallas_src>
import functools

import jax
import jax.numpy as jnp
from jax.experimental import pallas as pl
from jax.experimental.pallas import tpu as pltpu


def _independent_dropout_kernel(*refs, keep_thresh, n_items):
    """refs = (bits_ref, x_1..x_n refs, o_1..o_n refs).

    bits_ref: (row_tile, n_items) int32 uniform in [0, 2**24)
    x_k/o_k : (row_tile, H_k)
    """
    bits_ref = refs[0]
    x_refs = refs[1:1 + n_items]
    o_refs = refs[1 + n_items:]

    # Integer threshold compare -> per-row Bernoulli(keep_prob) masks.
    masks = (bits_ref[...] < keep_thresh).astype(jnp.float32)       # (tr, n)
    total = jnp.sum(masks, axis=-1, keepdims=True)                  # (tr, 1)
    scale = float(n_items) / jnp.maximum(total, 1.0)                # (tr, 1)

    for k in range(n_items):
        factor = masks[:, k:k + 1] * scale                          # (tr, 1)
        o_refs[k][...] = (x_refs[k][...].astype(jnp.float32)
                          * factor).astype(o_refs[k].dtype)


def independent_dropout(*items, p=0.5, key=None, training=True, row_tile=None):
    """JAX/Pallas equivalent of IndependentDropout.forward(*items)."""
    if not training:
        return tuple(items)

    n = len(items)
    assert n >= 1
    B, S = items[0].shape[:2]
    for x in items:
        assert x.ndim == 3 and x.shape[:2] == (B, S), \
            "items must be [B, S, H_k] and share leading [B, S] dims"
    Hs = [int(x.shape[2]) for x in items]
    N = B * S

    if key is None:
        key = jax.random.PRNGKey(0)

    keep_prob = 1.0 - float(p)
    keep_thresh = int(round(keep_prob * (1 << 24)))  # compare in int, no f32 convert
    # One row of n random ints per (B, S) position; tiny relative to the data.
    bits = jax.random.randint(key, (N, n), 0, 1 << 24, dtype=jnp.int32)

    flats = [x.reshape(N, H) for x, H in zip(items, Hs)]
    itemsize = max(jnp.dtype(x.dtype).itemsize for x in items)

    # --- Tile-size selection: biggest row tile that fits the VMEM budget. ---
    # Pipelined buffers: (inputs + outputs) double-buffered + the bits block.
    per_row_bytes = 2 * 2 * sum(Hs) * itemsize + 2 * n * 4
    buffer_budget = 24 * 1024 * 1024          # keep well under the 48 MiB limit
    if row_tile is None:
        row_tile = max(8, min(2048, buffer_budget // per_row_bytes))
        row_tile = (row_tile // 8) * 8
    row_tile = min(int(row_tile), N)
    if N > 8:
        row_tile = max(8, (row_tile // 8) * 8)   # sublane-aligned tiles
    # (if N <= 8, row_tile == N equals the full array dim, which is allowed)

    grid = (pl.cdiv(N, row_tile),)

    in_specs = [pl.BlockSpec((row_tile, n), lambda i: (i, 0))]
    in_specs += [pl.BlockSpec((row_tile, H), lambda i: (i, 0)) for H in Hs]
    out_specs = tuple(pl.BlockSpec((row_tile, H), lambda i: (i, 0)) for H in Hs)
    out_shape = tuple(jax.ShapeDtypeStruct((N, H), x.dtype)
                      for x, H in zip(items, Hs))

    bytes_accessed = (2 * sum(N * H * jnp.dtype(x.dtype).itemsize
                              for x, H in zip(items, Hs))
                      + N * n * 4)

    kernel = functools.partial(_independent_dropout_kernel,
                               keep_thresh=keep_thresh, n_items=n)

    outs = pl.pallas_call(
        kernel,
        out_shape=out_shape,
        grid=grid,
        in_specs=in_specs,
        out_specs=out_specs,
        compiler_params=pltpu.CompilerParams(
            # Grid steps are fully independent (no in-kernel PRNG state), so
            # "parallel" lets v7x shard the loop across both TensorCores.
            dimension_semantics=("parallel",),
            # Raise the scoped-VMEM limit so large row tiles compile on v5e
            # (16 MiB default) while staying within v7x's 64 MiB physical VMEM.
            vmem_limit_bytes=48 * 1024 * 1024,
        ),
        cost_estimate=pl.CostEstimate(
            flops=2 * N * sum(Hs),
            transcendentals=0,
            bytes_accessed=int(bytes_accessed),
        ),
    )(bits, *flats)

    return tuple(o.reshape(x.shape) for o, x in zip(outs, items))


if __name__ == "__main__":
    key = jax.random.PRNGKey(0)
    k1, k2, kdrop = jax.random.split(key, 3)

    B, S, H = 2, 8, 32
    x1 = jax.random.normal(k1, (B, S, H), dtype=jnp.float32)
    x2 = jax.random.normal(k2, (B, S, H), dtype=jnp.float32)

    o1, o2 = independent_dropout(x1, x2, p=0.5, key=kdrop, training=True)
    o1 = jax.block_until_ready(o1)
    o2 = jax.block_until_ready(o2)
    assert o1.shape == x1.shape and o2.shape == x2.shape

    # Sanity: with p=0.5 and 2 items, each row's multiplier must be in {0,1,2},
    # the two multipliers of a row must sum to 0 or 2, and the factor must be
    # constant across the hidden dimension.
    f1 = o1[..., 0] / x1[..., 0]
    f2 = o2[..., 0] / x2[..., 0]
    r1, r2 = jnp.round(f1), jnp.round(f2)
    ok = jnp.isin(r1, jnp.array([0.0, 1.0, 2.0])).all()
    ok &= jnp.isin(r2, jnp.array([0.0, 1.0, 2.0])).all()
    ok &= jnp.isin(jnp.round(f1 + f2), jnp.array([0.0, 2.0])).all()
    ok &= jnp.allclose(o1, x1 * r1[..., None], rtol=1e-5, atol=1e-5)
    ok &= jnp.allclose(o2, x2 * r2[..., None], rtol=1e-5, atol=1e-5)
    assert bool(ok), "mask/scale semantics violated"

    # Eval mode is the identity.
    e1, e2 = independent_dropout(x1, x2, p=0.5, key=kdrop, training=False)
    assert bool(jnp.array_equal(e1, x1)) and bool(jnp.array_equal(e2, x2))

    print("KERNEL_OK")
</pallas_src>

<mosaic_0001>
module attributes {stable_mosaic.version = 11 : i64} {
  func.func @_independent_dropout_kernel(%arg0: i32, %arg1: memref<16x2xi32, #tpu.memory_space<vmem>>, %arg2: memref<16x32xf32, #tpu.memory_space<vmem>>, %arg3: memref<16x32xf32, #tpu.memory_space<vmem>>, %arg4: memref<16x32xf32, #tpu.memory_space<vmem>>, %arg5: memref<16x32xf32, #tpu.memory_space<vmem>>) attributes {dimension_semantics = [#tpu.dimension_semantics<parallel>], iteration_bounds = array<i64: 1>, scalar_prefetch = 0 : i64, scratch_operands = 0 : i64, tpu.core_type = #tpu.core_type<tc>, window_params = [{transform_indices = @transform_0, window_bounds = array<i64: 16, 2>}, {transform_indices = @transform_1, window_bounds = array<i64: 16, 32>}, {transform_indices = @transform_2, window_bounds = array<i64: 16, 32>}, {transform_indices = @transform_3, window_bounds = array<i64: 16, 32>}, {transform_indices = @transform_4, window_bounds = array<i64: 16, 32>}]} {
    %c0 = arith.constant 0 : index
    %c0_0 = arith.constant 0 : index
    %0 = vector.load %arg1[%c0, %c0_0] : memref<16x2xi32, #tpu.memory_space<vmem>>, vector<16x2xi32>
    %c8388608_i32 = arith.constant 8388608 : i32
    %1 = vector.broadcast %c8388608_i32 : i32 to vector<16x2xi32>
    %2 = arith.cmpi slt, %0, %1 : vector<16x2xi32>
    %3 = arith.extui %2 : vector<16x2xi1> to vector<16x2xi32>
    %4 = arith.sitofp %3 : vector<16x2xi32> to vector<16x2xf32>
    %cst = arith.constant dense<0.000000e+00> : vector<16xf32>
    %5 = vector.multi_reduction <add>, %4, %cst [1] : vector<16x2xf32> to vector<16xf32>
    %6 = vector.shape_cast %5 : vector<16xf32> to vector<16x1xf32>
    %cst_1 = arith.constant 1.000000e+00 : f32
    %7 = vector.broadcast %cst_1 : f32 to vector<16x1xf32>
    %8 = arith.maximumf %6, %7 : vector<16x1xf32>
    %cst_2 = arith.constant 2.000000e+00 : f32
    %9 = vector.broadcast %cst_2 : f32 to vector<16x1xf32>
    %10 = arith.divf %9, %8 : vector<16x1xf32>
    %11 = vector.extract_strided_slice %4 {offsets = [0, 0], sizes = [16, 1], strides = [1, 1]} : vector<16x2xf32> to vector<16x1xf32>
    %12 = arith.mulf %11, %10 : vector<16x1xf32>
    %c0_3 = arith.constant 0 : index
    %c0_4 = arith.constant 0 : index
    %13 = vector.load %arg2[%c0_3, %c0_4] : memref<16x32xf32, #tpu.memory_space<vmem>>, vector<16x32xf32>
    %14 = vector.broadcast %12 : vector<16x1xf32> to vector<16x32xf32>
    %15 = arith.mulf %13, %14 : vector<16x32xf32>
    %c0_5 = arith.constant 0 : index
    %c0_6 = arith.constant 0 : index
    %16 = vector.load %arg4[%c0_5, %c0_6] : memref<16x32xf32, #tpu.memory_space<vmem>>, vector<16x32xf32>
    tpu.vector_store %arg4[%c0_5, %c0_6], %15 {strides = array<i32>} : memref<16x32xf32, #tpu.memory_space<vmem>>, vector<16x32xf32>,
    %17 = vector.extract_strided_slice %4 {offsets = [0, 1], sizes = [16, 1], strides = [1, 1]} : vector<16x2xf32> to vector<16x1xf32>
    %18 = arith.mulf %17, %10 : vector<16x1xf32>
    %c0_7 = arith.constant 0 : index
    %c0_8 = arith.constant 0 : index
    %19 = vector.load %arg3[%c0_7, %c0_8] : memref<16x32xf32, #tpu.memory_space<vmem>>, vector<16x32xf32>
    %20 = vector.broadcast %18 : vector<16x1xf32> to vector<16x32xf32>
    %21 = arith.mulf %19, %20 : vector<16x32xf32>
    %c0_9 = arith.constant 0 : index
    %c0_10 = arith.constant 0 : index
    %22 = vector.load %arg5[%c0_9, %c0_10] : memref<16x32xf32, #tpu.memory_space<vmem>>, vector<16x32xf32>
    tpu.vector_store %arg5[%c0_9, %c0_10], %21 {strides = array<i32>} : memref<16x32xf32, #tpu.memory_space<vmem>>, vector<16x32xf32>,
    return
  }
  func.func @transform_0(%arg0: i32) -> (i32, i32) {
    %c0_i32 = arith.constant 0 : i32
    %c0_i32_0 = arith.constant 0 : i32
    return %arg0, %c0_i32 : i32, i32
  }
  func.func @transform_1(%arg0: i32) -> (i32, i32) {
    %c0_i32 = arith.constant 0 : i32
    %c0_i32_0 = arith.constant 0 : i32
    return %arg0, %c0_i32 : i32, i32
  }
  func.func @transform_2(%arg0: i32) -> (i32, i32) {
    %c0_i32 = arith.constant 0 : i32
    %c0_i32_0 = arith.constant 0 : i32
    return %arg0, %c0_i32 : i32, i32
  }
  func.func @transform_3(%arg0: i32) -> (i32, i32) {
    %c0_i32 = arith.constant 0 : i32
    %c0_i32_0 = arith.constant 0 : i32
    return %arg0, %c0_i32 : i32, i32
  }
  func.func @transform_4(%arg0: i32) -> (i32, i32) {
    %c0_i32 = arith.constant 0 : i32
    %c0_i32_0 = arith.constant 0 : i32
    return %arg0, %c0_i32 : i32, i32
  }
}

</mosaic_0001>

<bundles_post_ra>
// kernel: tpu_custom_call.1
= control target key start
LH: loop header
LB: loop body
LE: loop exit
PB: predicated region body
PF: predicated region fallthrough
CT: control target
= control target key end

     0   :  { %10 = vsyncpa [#allocation3], 0  ;;  %s302_s0 = inlined_call_operand.vmem [shape: s32[16,2], index: 0, kind: input, shape index: {}]   ;;  %s303_s1 = inlined_call_operand.vmem [shape: f32[16,32], index: 1, kind: input, shape index: {}]   ;;  %s304_s2 = inlined_call_operand.hbm [shape: f32[16,32], index: 2, kind: input, shape index: {}]   ;;  %s305_s3 = inlined_call_operand.hbm [shape: f32[16,32], index: 3, kind: output, shape index: {0}]   ;;  %s306_s4 = inlined_call_operand.hbm [shape: f32[16,32], index: 4, kind: output, shape index: {1}]  }
   0x1   :  { %11 = vsyncpa [#allocation4], 0 }
   0x2   :  { %12 = vsyncpa [#allocation7], 0  ;;  %s208_s15 = smov [#allocation2]   ;;  %s136_s19 = scalar_lea.hbm %s304_s2, 256 }
   0x3   :  { %s22_s16 = sshll.u32 %s208_s15, 4  ;;  %p137_p0 = scmp.ne.s32.totalorder %s304_s2, %s136_s19  ;;  %s23_s16 = int_to_ptr.vmem [resolvable:$true] %s22_s16 }
   0x4   :  { %p140_p1 = scmp.lt.u32.totalorder %s136_s19, %s304_s2 }
   0x6   :  { %p142_p2 = pnand %p140_p1, %p137_p0 }
   0x8   :  { %145 = shalt.err (!%p142_p2)
}
   0x9   :  { %s146_s24 = scalar_lea.vmem %s23_s16, 256  ;;  %p151_p4 = scmp.lt.s32.totalorder %s23_s16, %s23_s16 }
   0xa   :  { %p147_p3 = scmp.ne.s32.totalorder %s23_s16, %s146_s24  ;;  %p152_p5 = scmp.lt.s32.totalorder %s146_s24, %s146_s24 }
   0xc   :  { %p153_p6 = por %p152_p5, %p151_p4 }
   0xe   :  { %p154_p7 = pnand %p153_p6, %p147_p3 }
  0x10   :  { %157 = shalt.err (!%p154_p7)
}
  0x11   :  { %s209_s25 = smov 128   ;;  %s210_s26 = smov 8  }
  0x12   :  { %28 = dma.hbm_to_vmem [thread:$0]  %s304_s2, 256, %s23_s16, [#allocation3], %s209_s25, %s209_s25, %s210_s26  }
  0x13   :  { %202 = dma.done.wait [#allocation3], 256  }
  0x14   :  { %203 = vsyncadd [#allocation3], 4294967040  ;;  %v32_v0 = vld [vmem:[%s302_s0] sm:$0xff]  ;;  %vm40_vm0 = vcmask 15360   ;;  %v33_v1 = vld [vmem:[%s302_s0 + $0x8] sm:$0xff]  ;;  %v211_v2 = vmov 0.0  }
  0x15   :  { %vm34_vm1 = vcmp.lt.s32.totalorder %v32_v0, 8388608  ;;  %vm35_vm2 = vcmp.lt.s32.totalorder %v33_v1, 8388608  ;;  %v212_v7 = vmov 1   ;;  %v213_v8 = vmov 0   ;;  %v55_v19 = vld [vmem:[%s303_s1] sm:$0xff]  ;;  %v56_v25 = vld [vmem:[%s303_s1 + $0x8] sm:$0xff] }
  0x16   :  { %v119_v3 = vsel %vm34_vm1, 1.0, %v211_v2  ;;  %v120_v4 = vsel %vm35_vm2, 1.0, %v211_v2  ;;  %130 = vset.pattern.permute.xlu0 %v212_v7  ;;  %129 = vset.pattern.permute.xlu1 %v213_v8  ;;  %v72_v20 = vld [vmem:[#allocation2] sm:$0xff]  ;;  %vm69_vm3 = vcmask 261120   ;;  %s214_s9 = smov [#allocation5]   ;;  %v73_v28 = vld [vmem:[#allocation2 + $0x8] sm:$0xff] }
  0x17   :  { %v41_v5 = vsel %vm40_vm0, %v119_v3, 0.0  ;;  %v44_v6 = vsel %vm40_vm0, %v120_v4, 0.0  ;;  %s91_s10 = sshll.u32 %s214_s9, 4  ;;  %s215_s11 = smov [#allocation6]   ;;  %s92_s10 = int_to_ptr.vmem [resolvable:$true] %s91_s10 }
  0x18   :  { %42 = vadd.xlane.f32.xlu0 %v41_v5  ;;  %s103_s12 = sshll.u32 %s215_s11, 4  ;;  %s158_s13 = scalar_lea.vmem %s92_s10, 256  ;;  %s104_s12 = int_to_ptr.vmem [resolvable:$true] %s103_s12 }
  0x19   :  { %p159_p8 = scmp.ne.s32.totalorder %s92_s10, %s158_s13  ;;  %p163_p9 = scmp.lt.s32.totalorder %s92_s10, %s92_s10 }
  0x1a   :  { %p164_p10 = scmp.lt.s32.totalorder %s158_s13, %s158_s13 }
  0x1c   :  { %45 = vadd.xlane.f32.xlu0 %v44_v6  ;;  %p165_p11 = por %p164_p10, %p163_p9 }
  0x1e   :  { %p166_p12 = pnand %p165_p11, %p159_p8 }
  0xa5   :  { %v43_v9 = vpop.xlane.xlu0 %42 }
  0xa6   :  { %v47_v10 = vmax.f32 %v43_v9, 1.0 }
  0xa8   :  { %132 = vrcp.f32 %v47_v10 }
  0xa9   :  { %v46_v11 = vpop.xlane.xlu0 %45 }
  0xaa   :  { %v48_v12 = vmax.f32 %v46_v11, 1.0 }
  0xac   :  { %134 = vrcp.f32 %v48_v12 }
  0xb2   :  { %v133_v13 = vpop.eup %132 }
  0xb3   :  { %v50_v14 = vmul.f32 2.0, %v133_v13 }
  0xb5   :  { %v53_v15 = vmul.f32 %v119_v3, %v50_v14 }
  0xb6   :  { %v135_v16 = vpop.eup %134 }
  0xb7   :  { %v52_v17 = vmul.f32 2.0, %v135_v16  ;;  %75 = vperm.xlu0 %130, %v53_v15   ;;  %59 = vperm.xlu1 %129, %v53_v15  }
  0xb9   :  { %v54_v18 = vmul.f32 %v120_v4, %v52_v17 }
  0xbb   :  { %64 = vperm.xlu1 %129, %v54_v18  }
  0xbf   :  { %131 = vset.pattern.permute.xlu1 %v212_v7 }
  0xc0   :  { %79 = vperm.xlu1 %131, %v54_v18  }
 0x136   :  { %v60_v21 = vpop.permute.xlu1 %59  ;;  %v76_v22 = vpop.permute.xlu0 %75 }
 0x137   :  { %v67_v23 = vmul.f32 %v60_v21, %v55_v19  ;;  %v82_v24 = vmul.f32 %v76_v22, %v72_v20 }
 0x139   :  { %70 = vst.msk [vmem:[#allocation5] sm:$0xff] %vm69_vm3, %v67_v23  ;;  %84 = vst.msk [vmem:[#allocation6] sm:$0xff] %vm69_vm3, %v82_v24 }
 0x13a   :  { %v65_v26 = vpop.permute.xlu1 %64 }
 0x13b   :  { %v68_v27 = vmul.f32 %v65_v26, %v56_v25 }
 0x13d   :  { %71 = vst.msk [vmem:[#allocation5 + $0x8] sm:$0xff] %vm69_vm3, %v68_v27 }
 0x13e   :  { %169 = shalt.err (!%p166_p12)
}
 0x13f   :  { %s170_s15 = scalar_lea.hbm %s305_s3, 256 }
 0x140   :  { %p171_p13 = scmp.ne.s32.totalorder %s305_s3, %s170_s15  ;;  %p174_p0 = scmp.lt.u32.totalorder %s170_s15, %s305_s3 }
 0x142   :  { %p176_p1 = pnand %p174_p0, %p171_p13 }
 0x144   :  { %179 = shalt.err (!%p176_p1)
}
 0x145   :  { %97 = dma.vmem_to_hbm [thread:$0]  %s92_s10, 256, %s305_s3, [#allocation4], %s209_s25, %s209_s25, %s210_s26   ;;  %v80_v29 = vpop.permute.xlu1 %79 }
 0x146   :  { %v83_v30 = vmul.f32 %v80_v29, %v73_v28  ;;  %s180_s22 = scalar_lea.vmem %s104_s12, 256  ;;  %p185_p3 = scmp.lt.s32.totalorder %s104_s12, %s104_s12 }
 0x147   :  { %p181_p2 = scmp.ne.s32.totalorder %s104_s12, %s180_s22  ;;  %p186_p4 = scmp.lt.s32.totalorder %s180_s22, %s180_s22 }
 0x148   :  { %85 = vst.msk [vmem:[#allocation6 + $0x8] sm:$0xff] %vm69_vm3, %v83_v30 }
 0x149   :  { %p187_p5 = por %p186_p4, %p185_p3 }
 0x14b   :  { %p188_p6 = pnand %p187_p5, %p181_p2 }
 0x14d   :  { %191 = shalt.err (!%p188_p6)
}
 0x14e   :  { %s192_s27 = scalar_lea.hbm %s306_s4, 256 }
 0x14f   :  { %p193_p7 = scmp.ne.s32.totalorder %s306_s4, %s192_s27  ;;  %p196_p8 = scmp.lt.u32.totalorder %s192_s27, %s306_s4 }
 0x151   :  { %p198_p9 = pnand %p196_p8, %p193_p7 }
 0x153   :  { %201 = shalt.err (!%p198_p9)
}
 0x154   :  { %109 = dma.vmem_to_hbm [thread:$0]  %s104_s12, 256, %s306_s4, [#allocation7], %s209_s25, %s209_s25, %s210_s26  }
 0x155   :  { %204 = dma.done.wait [#allocation4], 256  }
 0x156   :  { %205 = vsyncadd [#allocation4], 4294967040 }
 0x157   :  { %206 = dma.done.wait [#allocation7], 256  }
 0x158   :  { %207 = vsyncadd [#allocation7], 4294967040 }
 0x159   :  { %116 = vsyncpa [#allocation3], 1 }
 0x15a   :  { %117 = vsyncpa [#allocation4], 1 }
 0x15b   :  { %118 = vsyncpa [#allocation7], 1 }

</bundles_post_ra>
